<compile_context>
chip_gen: v5e
topology: v5e:2x2
jax: 0.10.0
libtpu: 0.0.40
codegen_flags: <defaults>
</compile_context>

<pallas_src>
import functools

import jax
import jax.numpy as jnp
from jax.experimental import pallas as pl
from jax.experimental.pallas import tpu as pltpu


def _attention_kernel(x_ref, wqkv_ref, wo_ref, bo_ref, mask_ref, o_ref, *,
                      heads, dim_head, seq_len, apply_mask):
    # x_ref   : (M, D)        f32, M = bt * Np (bt batch elements, rows flat)
    # wqkv_ref: (D, 3*inner)  bf16, softmax scale folded into the Q columns
    # wo_ref  : (inner, D)    bf16
    # bo_ref  : (1, D)        f32
    # mask_ref: (1, Np)       f32, 0 for real keys / -1e30 for padded keys
    # o_ref   : (M, D)        f32
    H, d, Np = heads, dim_head, seq_len
    M, D = x_ref.shape
    bt = M // Np
    inner = H * d

    # In-kernel bf16 cast (cheap VPU pack hidden under the pipeline) — avoids a
    # separate host-side cast pass over x in HBM.
    x = x_ref[...].astype(jnp.bfloat16)

    # One lane-dense QKV projection on the MXU, f32 accumulation.
    qkv = jnp.dot(x, wqkv_ref[...], preferred_element_type=jnp.float32)  # (M, 3*inner)

    if apply_mask:
        key_mask = mask_ref[...]                                  # (1, Np)

    # Attention core per head.  Static (unrolled) loop with static lane slices
    # of the qkv columns and leading-batch einsums: no 4-D transposes or
    # dynamic lane offsets, and only one head's (bt, Np, Np) score/softmax
    # tensors are live per iteration.
    ctx_heads = []
    for h in range(H):
        def head_slice(base, _h=h):
            t = qkv[:, base + _h * d: base + (_h + 1) * d]        # (M, d) static slice
            return t.reshape(bt, Np, d).astype(jnp.bfloat16)      # aligned sublane split

        q_h = head_slice(0)
        k_h = head_slice(inner)
        v_h = head_slice(2 * inner)

        # Scores: batched NT matmul (no explicit transpose); scale already in Wq.
        s = jnp.einsum('bnd,bmd->bnm', q_h, k_h,
                       preferred_element_type=jnp.float32)        # (bt, Np, Np)
        if apply_mask:
            s = s + key_mask                                      # mask padded key cols

        # Numerically stable softmax in f32; denominator reciprocal goes to the
        # otherwise-idle EUP slot.
        s = s - jnp.max(s, axis=-1, keepdims=True)
        p = jnp.exp(s)
        attn = p * pl.reciprocal(jnp.sum(p, axis=-1, keepdims=True), approx=True)

        ctx = jnp.einsum('bnm,bmd->bnd', attn.astype(jnp.bfloat16), v_h,
                         preferred_element_type=jnp.float32)      # (bt, Np, d)
        ctx_heads.append(ctx.reshape(M, d).astype(jnp.bfloat16))

    # (M, inner) with (h d) column order — matches PyTorch 'b h n d -> b n (h d)'.
    ctx_all = jnp.concatenate(ctx_heads, axis=-1)

    # Output projection: head reduction fused into the MXU contraction
    # (contraction dim = inner), bias added in f32.
    out = jnp.dot(ctx_all, wo_ref[...], preferred_element_type=jnp.float32) + bo_ref[...]
    o_ref[...] = out.astype(o_ref.dtype)


def _vmem_footprint_bytes(bt, Np, D, inner):
    """Rough per-grid-step VMEM footprint estimate (bytes)."""
    M = bt * Np
    fp = 0
    fp += 2 * 2 * M * D * 4                              # x + out blocks, double buffered, f32
    fp += 2 * (3 * inner * D * 2 + inner * D * 2)        # wqkv + wo bf16, 2 buffers each
    fp += 2 * (D * 4 + Np * 4)                           # bias + mask, 2 buffers
    fp += M * 3 * inner * 4                              # qkv f32
    fp += 3 * M * inner * 2                              # bf16 q/k/v slices (upper bound)
    fp += 3 * bt * Np * Np * 4                           # one head's scores / exp / attn (f32)
    fp += 2 * M * inner * 2                              # ctx pieces + concat (bf16)
    fp += 2 * M * D * 4                                  # f32 projection output + headroom
    return fp


def _pick_block_b(B, Np, D, inner, *, max_rows=1024, budget_bytes=24 << 20):
    """Largest divisor of B whose tile fits the conservative (v7x-safe) budget."""
    best = 1
    for bt in range(1, B + 1):
        if B % bt:
            continue
        if bt * Np > max_rows:
            break
        if _vmem_footprint_bytes(bt, Np, D, inner) > budget_bytes:
            break
        best = bt
    # Keep grid >= 2 so both v7x TensorCores get work (no-op on 1-TC v5e/v6e).
    while best > 1 and B // best < 2:
        best -= 1
        while B % best:
            best -= 1
    return best


def attention_forward(x, w_qkv, w_out, b_out=None, *, heads, dim_head, block_b=None):
    """x: (B, N, D); w_qkv: (3*inner, D); w_out: (D, inner); b_out: (D,) (PyTorch layouts)."""
    B, N, D = x.shape
    inner = heads * dim_head
    scale = dim_head ** (-0.5)
    if b_out is None:
        b_out = jnp.zeros((D,), jnp.float32)

    # ---- host-side weight prep (one-time, trace-level) ----------------------
    wq, wk, wv = w_qkv[:inner], w_qkv[inner:2 * inner], w_qkv[2 * inner:]
    # nn.Linear weights are (out, in); kernel right-multiplies, so transpose.
    # Softmax scale folded into the Q columns (free at runtime).
    wqkv = jnp.concatenate([wq.T * scale, wk.T, wv.T], axis=1).astype(jnp.bfloat16)  # (D, 3*inner)
    wo = w_out.T.astype(jnp.bfloat16)                                                # (inner, D)
    bo = b_out.reshape(1, D).astype(jnp.float32)

    # ---- sequence padding: keep blocks sublane-aligned for any N ------------
    if N % 8 == 0:
        Np = N
    else:
        Np = ((N + 15) // 16) * 16          # e.g. ViT N=197 -> 208 (bf16-friendly)
    pad = Np - N
    if pad:
        x = jnp.pad(x, ((0, 0), (0, pad), (0, 0)))
    # Additive key mask: 0 for real keys, -1e30 for padded key columns.
    mask = jnp.where(jnp.arange(Np) < N, 0.0, -1e30).astype(jnp.float32).reshape(1, Np)

    x_rows = x.reshape(B * Np, D)            # stays f32; cast to bf16 in-kernel

    # ---- batch tile size -----------------------------------------------------
    if block_b is None:
        bt = _pick_block_b(B, Np, D, inner)
    else:
        bt = max(1, min(block_b, B))
        while B % bt:
            bt -= 1

    fp = _vmem_footprint_bytes(bt, Np, D, inner)
    vmem_limit = int(min(48 << 20, max(32 << 20, 2 * fp)))

    kernel = functools.partial(
        _attention_kernel, heads=heads, dim_head=dim_head, seq_len=Np,
        apply_mask=(pad > 0))

    # TODO(synk): weight BlockSpecs still get the default 2 buffers; a
    # Buffered(1) pipeline_mode would save a few MiB at production D/inner.
    out_rows = pl.pallas_call(
        kernel,
        out_shape=jax.ShapeDtypeStruct((B * Np, D), x.dtype),
        grid_spec=pltpu.PrefetchScalarGridSpec(
            num_scalar_prefetch=0,
            grid=(B // bt,),
            in_specs=[
                pl.BlockSpec((bt * Np, D), lambda b: (b, 0)),
                pl.BlockSpec((D, 3 * inner), lambda b: (0, 0)),
                pl.BlockSpec((inner, D), lambda b: (0, 0)),
                pl.BlockSpec((1, D), lambda b: (0, 0)),
                pl.BlockSpec((1, Np), lambda b: (0, 0)),
            ],
            out_specs=pl.BlockSpec((bt * Np, D), lambda b: (b, 0)),
        ),
        compiler_params=pltpu.CompilerParams(
            dimension_semantics=("parallel",),
            vmem_limit_bytes=vmem_limit),
    )(x_rows, wqkv, wo, bo, mask)

    out = out_rows.reshape(B, Np, D)
    if pad:
        out = out[:, :N, :]
    return out


def attention_reference(x, w_qkv, w_out, b_out, *, heads, dim_head):
    """Pure-JAX f32 reference mirroring the PyTorch forward."""
    B, N, D = x.shape
    inner = heads * dim_head
    scale = dim_head ** (-0.5)
    qkv = x @ w_qkv.T                                             # (B, N, 3*inner)
    q, k, v = jnp.split(qkv, 3, axis=-1)

    def split_heads(t):  # b n (h d) -> b h n d
        return t.reshape(B, N, heads, dim_head).transpose(0, 2, 1, 3)

    q, k, v = map(split_heads, (q, k, v))
    dots = jnp.einsum('bhnd,bhmd->bhnm', q, k) * scale
    attn = jax.nn.softmax(dots, axis=-1)
    out = jnp.einsum('bhnm,bhmd->bhnd', attn, v)
    out = out.transpose(0, 2, 1, 3).reshape(B, N, inner)
    return out @ w_out.T + b_out


if __name__ == "__main__":
    # TODO(synk): nn.Dropout in to_out is identity (eval / dropout=0.0) and is omitted.
    # TODO(synk): return_attn=True path (returning the attention map) is not implemented.
    heads, dim_head = 4, 8
    inner = heads * dim_head  # 32
    D = 32

    key = jax.random.PRNGKey(0)
    kx, kq, ko, kb, kx2 = jax.random.split(key, 5)
    # PyTorch nn.Linear weight layout: (out_features, in_features).
    w_qkv = jax.random.normal(kq, (3 * inner, D), dtype=jnp.float32) * (D ** -0.5)
    w_out = jax.random.normal(ko, (D, inner), dtype=jnp.float32) * (inner ** -0.5)
    b_out = jax.random.normal(kb, (D,), dtype=jnp.float32) * 0.1

    # Test 1: aligned sequence length (no padding path).
    B, N = 2, 8
    x = jax.random.normal(kx, (B, N, D), dtype=jnp.float32)
    out = attention_forward(x, w_qkv, w_out, b_out, heads=heads, dim_head=dim_head)
    out = jax.block_until_ready(out)
    ref = attention_reference(x, w_qkv, w_out, b_out, heads=heads, dim_head=dim_head)
    # bf16 MXU inputs + approx reciprocal -> ~1e-2-level error vs the f32 reference.
    assert jnp.allclose(out, ref, atol=5e-2, rtol=5e-2), "mismatch vs reference (N=8)"

    # Test 2: ragged sequence length (exercises padding + key masking).
    B2, N2 = 4, 10
    x2 = jax.random.normal(kx2, (B2, N2, D), dtype=jnp.float32)
    out2 = attention_forward(x2, w_qkv, w_out, b_out, heads=heads, dim_head=dim_head)
    out2 = jax.block_until_ready(out2)
    ref2 = attention_reference(x2, w_qkv, w_out, b_out, heads=heads, dim_head=dim_head)
    assert jnp.allclose(out2, ref2, atol=5e-2, rtol=5e-2), "mismatch vs reference (N=10)"

    print("KERNEL_OK")
</pallas_src>

<mosaic_0001>
module attributes {stable_mosaic.version = 11 : i64} {
  func.func @_attention_kernel(%arg0: i32, %arg1: memref<8x32xf32, #tpu.memory_space<vmem>>, %arg2: memref<32x96xbf16, #tpu.memory_space<vmem>>, %arg3: memref<32x32xbf16, #tpu.memory_space<vmem>>, %arg4: memref<1x32xf32, #tpu.memory_space<vmem>>, %arg5: memref<1x8xf32, #tpu.memory_space<vmem>>, %arg6: memref<8x32xf32, #tpu.memory_space<vmem>>) attributes {dimension_semantics = [#tpu.dimension_semantics<parallel>], iteration_bounds = array<i64: 2>, scalar_prefetch = 0 : i64, scratch_operands = 0 : i64, tpu.core_type = #tpu.core_type<tc>, window_params = [{transform_indices = @transform_0, window_bounds = array<i64: 8, 32>}, {pipeline_mode = #tpu.pipeline_mode<synchronous>, transform_indices = @transform_1, window_bounds = array<i64: 32, 96>}, {pipeline_mode = #tpu.pipeline_mode<synchronous>, transform_indices = @transform_2, window_bounds = array<i64: 32, 32>}, {pipeline_mode = #tpu.pipeline_mode<synchronous>, transform_indices = @transform_3, window_bounds = array<i64: 1, 32>}, {pipeline_mode = #tpu.pipeline_mode<synchronous>, transform_indices = @transform_4, window_bounds = array<i64: 1, 8>}, {transform_indices = @transform_5, window_bounds = array<i64: 8, 32>}]} {
    %c0 = arith.constant 0 : index
    %c0_0 = arith.constant 0 : index
    %0 = vector.load %arg1[%c0, %c0_0] : memref<8x32xf32, #tpu.memory_space<vmem>>, vector<8x32xf32>
    %1 = arith.truncf %0 : vector<8x32xf32> to vector<8x32xbf16>
    %c0_1 = arith.constant 0 : index
    %c0_2 = arith.constant 0 : index
    %2 = vector.load %arg2[%c0_1, %c0_2] : memref<32x96xbf16, #tpu.memory_space<vmem>>, vector<32x96xbf16>
    %cst = arith.constant dense<0.000000e+00> : vector<8x96xf32>
    %3 = tpu.matmul %1, %2, %cst {dimension_numbers = #tpu.dot_dimension_numbers<[1], [0], [0], [1], [0, 0, 1, 1], [], []>} : vector<8x32xbf16>, vector<32x96xbf16>, vector<8x96xf32> -> vector<8x96xf32>
    %4 = vector.extract_strided_slice %3 {offsets = [0, 0], sizes = [8, 8], strides = [1, 1]} : vector<8x96xf32> to vector<8x8xf32>
    %5 = vector.shape_cast %4 : vector<8x8xf32> to vector<1x8x8xf32>
    %6 = arith.truncf %5 : vector<1x8x8xf32> to vector<1x8x8xbf16>
    %7 = vector.extract_strided_slice %3 {offsets = [0, 32], sizes = [8, 8], strides = [1, 1]} : vector<8x96xf32> to vector<8x8xf32>
    %8 = vector.shape_cast %7 : vector<8x8xf32> to vector<1x8x8xf32>
    %9 = arith.truncf %8 : vector<1x8x8xf32> to vector<1x8x8xbf16>
    %10 = vector.extract_strided_slice %3 {offsets = [0, 64], sizes = [8, 8], strides = [1, 1]} : vector<8x96xf32> to vector<8x8xf32>
    %11 = vector.shape_cast %10 : vector<8x8xf32> to vector<1x8x8xf32>
    %12 = arith.truncf %11 : vector<1x8x8xf32> to vector<1x8x8xbf16>
    "tpu.trace_start"() <{level = 10 : i32, message = "bnd,bmd->bnm"}> : () -> ()
    %cst_3 = arith.constant dense<0.000000e+00> : vector<1x8x8xf32>
    %13 = tpu.matmul %6, %9, %cst_3 {dimension_numbers = #tpu.dot_dimension_numbers<[2], [2], [1], [1], [0, 0, 0, 1, 1, 1], [0], [0]>} : vector<1x8x8xbf16>, vector<1x8x8xbf16>, vector<1x8x8xf32> -> vector<1x8x8xf32>
    "tpu.trace_stop"() : () -> ()
    %cst_4 = arith.constant dense<0xFF800000> : vector<1x8xf32>
    %14 = vector.multi_reduction <maximumf>, %13, %cst_4 [2] : vector<1x8x8xf32> to vector<1x8xf32>
    %15 = vector.shape_cast %14 : vector<1x8xf32> to vector<1x8x1xf32>
    %16 = vector.broadcast %15 : vector<1x8x1xf32> to vector<1x8x8xf32>
    %17 = arith.subf %13, %16 : vector<1x8x8xf32>
    %18 = math.exp %17 : vector<1x8x8xf32>
    %cst_5 = arith.constant dense<0.000000e+00> : vector<1x8xf32>
    %19 = vector.multi_reduction <add>, %18, %cst_5 [2] : vector<1x8x8xf32> to vector<1x8xf32>
    %20 = vector.shape_cast %19 : vector<1x8xf32> to vector<1x8x1xf32>
    %21 = tpu.reciprocal %20 {approx = true} : vector<1x8x1xf32> -> vector<1x8x1xf32>
    %22 = vector.broadcast %21 : vector<1x8x1xf32> to vector<1x8x8xf32>
    %23 = arith.mulf %18, %22 : vector<1x8x8xf32>
    %24 = arith.truncf %23 : vector<1x8x8xf32> to vector<1x8x8xbf16>
    "tpu.trace_start"() <{level = 10 : i32, message = "bnm,bmd->bnd"}> : () -> ()
    %cst_6 = arith.constant dense<0.000000e+00> : vector<1x8x8xf32>
    %25 = tpu.matmul %24, %12, %cst_6 {dimension_numbers = #tpu.dot_dimension_numbers<[2], [1], [1], [2], [0, 0, 0, 1, 1, 2], [0], [0]>} : vector<1x8x8xbf16>, vector<1x8x8xbf16>, vector<1x8x8xf32> -> vector<1x8x8xf32>
    "tpu.trace_stop"() : () -> ()
    %26 = vector.shape_cast %25 : vector<1x8x8xf32> to vector<8x8xf32>
    %27 = arith.truncf %26 : vector<8x8xf32> to vector<8x8xbf16>
    %28 = vector.extract_strided_slice %3 {offsets = [0, 8], sizes = [8, 8], strides = [1, 1]} : vector<8x96xf32> to vector<8x8xf32>
    %29 = vector.shape_cast %28 : vector<8x8xf32> to vector<1x8x8xf32>
    %30 = arith.truncf %29 : vector<1x8x8xf32> to vector<1x8x8xbf16>
    %31 = vector.extract_strided_slice %3 {offsets = [0, 40], sizes = [8, 8], strides = [1, 1]} : vector<8x96xf32> to vector<8x8xf32>
    %32 = vector.shape_cast %31 : vector<8x8xf32> to vector<1x8x8xf32>
    %33 = arith.truncf %32 : vector<1x8x8xf32> to vector<1x8x8xbf16>
    %34 = vector.extract_strided_slice %3 {offsets = [0, 72], sizes = [8, 8], strides = [1, 1]} : vector<8x96xf32> to vector<8x8xf32>
    %35 = vector.shape_cast %34 : vector<8x8xf32> to vector<1x8x8xf32>
    %36 = arith.truncf %35 : vector<1x8x8xf32> to vector<1x8x8xbf16>
    "tpu.trace_start"() <{level = 10 : i32, message = "bnd,bmd->bnm"}> : () -> ()
    %cst_7 = arith.constant dense<0.000000e+00> : vector<1x8x8xf32>
    %37 = tpu.matmul %30, %33, %cst_7 {dimension_numbers = #tpu.dot_dimension_numbers<[2], [2], [1], [1], [0, 0, 0, 1, 1, 1], [0], [0]>} : vector<1x8x8xbf16>, vector<1x8x8xbf16>, vector<1x8x8xf32> -> vector<1x8x8xf32>
    "tpu.trace_stop"() : () -> ()
    %cst_8 = arith.constant dense<0xFF800000> : vector<1x8xf32>
    %38 = vector.multi_reduction <maximumf>, %37, %cst_8 [2] : vector<1x8x8xf32> to vector<1x8xf32>
    %39 = vector.shape_cast %38 : vector<1x8xf32> to vector<1x8x1xf32>
    %40 = vector.broadcast %39 : vector<1x8x1xf32> to vector<1x8x8xf32>
    %41 = arith.subf %37, %40 : vector<1x8x8xf32>
    %42 = math.exp %41 : vector<1x8x8xf32>
    %cst_9 = arith.constant dense<0.000000e+00> : vector<1x8xf32>
    %43 = vector.multi_reduction <add>, %42, %cst_9 [2] : vector<1x8x8xf32> to vector<1x8xf32>
    %44 = vector.shape_cast %43 : vector<1x8xf32> to vector<1x8x1xf32>
    %45 = tpu.reciprocal %44 {approx = true} : vector<1x8x1xf32> -> vector<1x8x1xf32>
    %46 = vector.broadcast %45 : vector<1x8x1xf32> to vector<1x8x8xf32>
    %47 = arith.mulf %42, %46 : vector<1x8x8xf32>
    %48 = arith.truncf %47 : vector<1x8x8xf32> to vector<1x8x8xbf16>
    "tpu.trace_start"() <{level = 10 : i32, message = "bnm,bmd->bnd"}> : () -> ()
    %cst_10 = arith.constant dense<0.000000e+00> : vector<1x8x8xf32>
    %49 = tpu.matmul %48, %36, %cst_10 {dimension_numbers = #tpu.dot_dimension_numbers<[2], [1], [1], [2], [0, 0, 0, 1, 1, 2], [0], [0]>} : vector<1x8x8xbf16>, vector<1x8x8xbf16>, vector<1x8x8xf32> -> vector<1x8x8xf32>
    "tpu.trace_stop"() : () -> ()
    %50 = vector.shape_cast %49 : vector<1x8x8xf32> to vector<8x8xf32>
    %51 = arith.truncf %50 : vector<8x8xf32> to vector<8x8xbf16>
    %52 = vector.extract_strided_slice %3 {offsets = [0, 16], sizes = [8, 8], strides = [1, 1]} : vector<8x96xf32> to vector<8x8xf32>
    %53 = vector.shape_cast %52 : vector<8x8xf32> to vector<1x8x8xf32>
    %54 = arith.truncf %53 : vector<1x8x8xf32> to vector<1x8x8xbf16>
    %55 = vector.extract_strided_slice %3 {offsets = [0, 48], sizes = [8, 8], strides = [1, 1]} : vector<8x96xf32> to vector<8x8xf32>
    %56 = vector.shape_cast %55 : vector<8x8xf32> to vector<1x8x8xf32>
    %57 = arith.truncf %56 : vector<1x8x8xf32> to vector<1x8x8xbf16>
    %58 = vector.extract_strided_slice %3 {offsets = [0, 80], sizes = [8, 8], strides = [1, 1]} : vector<8x96xf32> to vector<8x8xf32>
    %59 = vector.shape_cast %58 : vector<8x8xf32> to vector<1x8x8xf32>
    %60 = arith.truncf %59 : vector<1x8x8xf32> to vector<1x8x8xbf16>
    "tpu.trace_start"() <{level = 10 : i32, message = "bnd,bmd->bnm"}> : () -> ()
    %cst_11 = arith.constant dense<0.000000e+00> : vector<1x8x8xf32>
    %61 = tpu.matmul %54, %57, %cst_11 {dimension_numbers = #tpu.dot_dimension_numbers<[2], [2], [1], [1], [0, 0, 0, 1, 1, 1], [0], [0]>} : vector<1x8x8xbf16>, vector<1x8x8xbf16>, vector<1x8x8xf32> -> vector<1x8x8xf32>
    "tpu.trace_stop"() : () -> ()
    %cst_12 = arith.constant dense<0xFF800000> : vector<1x8xf32>
    %62 = vector.multi_reduction <maximumf>, %61, %cst_12 [2] : vector<1x8x8xf32> to vector<1x8xf32>
    %63 = vector.shape_cast %62 : vector<1x8xf32> to vector<1x8x1xf32>
    %64 = vector.broadcast %63 : vector<1x8x1xf32> to vector<1x8x8xf32>
    %65 = arith.subf %61, %64 : vector<1x8x8xf32>
    %66 = math.exp %65 : vector<1x8x8xf32>
    %cst_13 = arith.constant dense<0.000000e+00> : vector<1x8xf32>
    %67 = vector.multi_reduction <add>, %66, %cst_13 [2] : vector<1x8x8xf32> to vector<1x8xf32>
    %68 = vector.shape_cast %67 : vector<1x8xf32> to vector<1x8x1xf32>
    %69 = tpu.reciprocal %68 {approx = true} : vector<1x8x1xf32> -> vector<1x8x1xf32>
    %70 = vector.broadcast %69 : vector<1x8x1xf32> to vector<1x8x8xf32>
    %71 = arith.mulf %66, %70 : vector<1x8x8xf32>
    %72 = arith.truncf %71 : vector<1x8x8xf32> to vector<1x8x8xbf16>
    "tpu.trace_start"() <{level = 10 : i32, message = "bnm,bmd->bnd"}> : () -> ()
    %cst_14 = arith.constant dense<0.000000e+00> : vector<1x8x8xf32>
    %73 = tpu.matmul %72, %60, %cst_14 {dimension_numbers = #tpu.dot_dimension_numbers<[2], [1], [1], [2], [0, 0, 0, 1, 1, 2], [0], [0]>} : vector<1x8x8xbf16>, vector<1x8x8xbf16>, vector<1x8x8xf32> -> vector<1x8x8xf32>
    "tpu.trace_stop"() : () -> ()
    %74 = vector.shape_cast %73 : vector<1x8x8xf32> to vector<8x8xf32>
    %75 = arith.truncf %74 : vector<8x8xf32> to vector<8x8xbf16>
    %76 = vector.extract_strided_slice %3 {offsets = [0, 24], sizes = [8, 8], strides = [1, 1]} : vector<8x96xf32> to vector<8x8xf32>
    %77 = vector.shape_cast %76 : vector<8x8xf32> to vector<1x8x8xf32>
    %78 = arith.truncf %77 : vector<1x8x8xf32> to vector<1x8x8xbf16>
    %79 = vector.extract_strided_slice %3 {offsets = [0, 56], sizes = [8, 8], strides = [1, 1]} : vector<8x96xf32> to vector<8x8xf32>
    %80 = vector.shape_cast %79 : vector<8x8xf32> to vector<1x8x8xf32>
    %81 = arith.truncf %80 : vector<1x8x8xf32> to vector<1x8x8xbf16>
    %82 = vector.extract_strided_slice %3 {offsets = [0, 88], sizes = [8, 8], strides = [1, 1]} : vector<8x96xf32> to vector<8x8xf32>
    %83 = vector.shape_cast %82 : vector<8x8xf32> to vector<1x8x8xf32>
    %84 = arith.truncf %83 : vector<1x8x8xf32> to vector<1x8x8xbf16>
    "tpu.trace_start"() <{level = 10 : i32, message = "bnd,bmd->bnm"}> : () -> ()
    %cst_15 = arith.constant dense<0.000000e+00> : vector<1x8x8xf32>
    %85 = tpu.matmul %78, %81, %cst_15 {dimension_numbers = #tpu.dot_dimension_numbers<[2], [2], [1], [1], [0, 0, 0, 1, 1, 1], [0], [0]>} : vector<1x8x8xbf16>, vector<1x8x8xbf16>, vector<1x8x8xf32> -> vector<1x8x8xf32>
    "tpu.trace_stop"() : () -> ()
    %cst_16 = arith.constant dense<0xFF800000> : vector<1x8xf32>
    %86 = vector.multi_reduction <maximumf>, %85, %cst_16 [2] : vector<1x8x8xf32> to vector<1x8xf32>
    %87 = vector.shape_cast %86 : vector<1x8xf32> to vector<1x8x1xf32>
    %88 = vector.broadcast %87 : vector<1x8x1xf32> to vector<1x8x8xf32>
    %89 = arith.subf %85, %88 : vector<1x8x8xf32>
    %90 = math.exp %89 : vector<1x8x8xf32>
    %cst_17 = arith.constant dense<0.000000e+00> : vector<1x8xf32>
    %91 = vector.multi_reduction <add>, %90, %cst_17 [2] : vector<1x8x8xf32> to vector<1x8xf32>
    %92 = vector.shape_cast %91 : vector<1x8xf32> to vector<1x8x1xf32>
    %93 = tpu.reciprocal %92 {approx = true} : vector<1x8x1xf32> -> vector<1x8x1xf32>
    %94 = vector.broadcast %93 : vector<1x8x1xf32> to vector<1x8x8xf32>
    %95 = arith.mulf %90, %94 : vector<1x8x8xf32>
    %96 = arith.truncf %95 : vector<1x8x8xf32> to vector<1x8x8xbf16>
    "tpu.trace_start"() <{level = 10 : i32, message = "bnm,bmd->bnd"}> : () -> ()
    %cst_18 = arith.constant dense<0.000000e+00> : vector<1x8x8xf32>
    %97 = tpu.matmul %96, %84, %cst_18 {dimension_numbers = #tpu.dot_dimension_numbers<[2], [1], [1], [2], [0, 0, 0, 1, 1, 2], [0], [0]>} : vector<1x8x8xbf16>, vector<1x8x8xbf16>, vector<1x8x8xf32> -> vector<1x8x8xf32>
    "tpu.trace_stop"() : () -> ()
    %98 = vector.shape_cast %97 : vector<1x8x8xf32> to vector<8x8xf32>
    %99 = arith.truncf %98 : vector<8x8xf32> to vector<8x8xbf16>
    %100 = tpu.concatenate %27, %51, %75, %99 in 1 : vector<8x8xbf16>, vector<8x8xbf16>, vector<8x8xbf16>, vector<8x8xbf16> -> vector<8x32xbf16>
    %c0_19 = arith.constant 0 : index
    %c0_20 = arith.constant 0 : index
    %101 = vector.load %arg3[%c0_19, %c0_20] : memref<32x32xbf16, #tpu.memory_space<vmem>>, vector<32x32xbf16>
    %cst_21 = arith.constant dense<0.000000e+00> : vector<8x32xf32>
    %102 = tpu.matmul %100, %101, %cst_21 {dimension_numbers = #tpu.dot_dimension_numbers<[1], [0], [0], [1], [0, 0, 1, 1], [], []>} : vector<8x32xbf16>, vector<32x32xbf16>, vector<8x32xf32> -> vector<8x32xf32>
    %c0_22 = arith.constant 0 : index
    %c0_23 = arith.constant 0 : index
    %103 = vector.load %arg4[%c0_22, %c0_23] : memref<1x32xf32, #tpu.memory_space<vmem>>, vector<1x32xf32>
    %104 = vector.broadcast %103 : vector<1x32xf32> to vector<8x32xf32>
    %105 = arith.addf %102, %104 : vector<8x32xf32>
    %c0_24 = arith.constant 0 : index
    %c0_25 = arith.constant 0 : index
    %106 = vector.load %arg6[%c0_24, %c0_25] : memref<8x32xf32, #tpu.memory_space<vmem>>, vector<8x32xf32>
    tpu.vector_store %arg6[%c0_24, %c0_25], %105 {strides = array<i32>} : memref<8x32xf32, #tpu.memory_space<vmem>>, vector<8x32xf32>,
    return
  }
  func.func @transform_0(%arg0: i32) -> (i32, i32) {
    %c0_i32 = arith.constant 0 : i32
    %c0_i32_0 = arith.constant 0 : i32
    return %arg0, %c0_i32 : i32, i32
  }
  func.func @transform_1(%arg0: i32) -> (i32, i32) {
    %c0_i32 = arith.constant 0 : i32
    %c0_i32_0 = arith.constant 0 : i32
    %c0_i32_1 = arith.constant 0 : i32
    return %c0_i32, %c0_i32_0 : i32, i32
  }
  func.func @transform_2(%arg0: i32) -> (i32, i32) {
    %c0_i32 = arith.constant 0 : i32
    %c0_i32_0 = arith.constant 0 : i32
    %c0_i32_1 = arith.constant 0 : i32
    return %c0_i32, %c0_i32_0 : i32, i32
  }
  func.func @transform_3(%arg0: i32) -> (i32, i32) {
    %c0_i32 = arith.constant 0 : i32
    %c0_i32_0 = arith.constant 0 : i32
    %c0_i32_1 = arith.constant 0 : i32
    return %c0_i32, %c0_i32_0 : i32, i32
  }
  func.func @transform_4(%arg0: i32) -> (i32, i32) {
    %c0_i32 = arith.constant 0 : i32
    %c0_i32_0 = arith.constant 0 : i32
    %c0_i32_1 = arith.constant 0 : i32
    return %c0_i32, %c0_i32_0 : i32, i32
  }
  func.func @transform_5(%arg0: i32) -> (i32, i32) {
    %c0_i32 = arith.constant 0 : i32
    %c0_i32_0 = arith.constant 0 : i32
    return %arg0, %c0_i32 : i32, i32
  }
}

</mosaic_0001>

<bundles_post_ra>
// kernel: tpu_custom_call.1
= control target key start
LH: loop header
LB: loop body
LE: loop exit
PB: predicated region body
PF: predicated region fallthrough
CT: control target
= control target key end

     0   :  { %10 = vsyncpa [#allocation3], 0  ;;  %s1257_s0 = inlined_call_operand.hbm [shape: f32[16,32], index: 0, kind: input, shape index: {}]   ;;  %s1258_s1 = inlined_call_operand.hbm [shape: bf16[32,96], index: 1, kind: input, shape index: {}]   ;;  %s1259_s2 = inlined_call_operand.hbm [shape: bf16[32,32], index: 2, kind: input, shape index: {}]   ;;  %s1260_s3 = inlined_call_operand.vmem [shape: f32[1,32], index: 3, kind: input, shape index: {}]   ;;  %s1261_s4 = inlined_call_operand.vmem [shape: f32[1,8], index: 4, kind: input, shape index: {}]   ;;  %s1262_s5 = inlined_call_operand.hbm [shape: f32[16,32], index: 5, kind: output, shape index: {}]  }
   0x1   :  { %12 = vsyncpa [#allocation3 + $0x1], 0 }
   0x2   :  { %13 = vsyncpa [#allocation6], 0 }
   0x3   :  { %14 = vsyncpa [#allocation4], 0 }
   0x4   :  { %16 = vsyncpa [#allocation4 + $0x1], 0  ;;  %s1064_s18 = smov 0   ;;  %s1066_s19 = smov 0  }
   0x5   :  { %s1068_s20 = smov 0   ;;  %s1070_s21 = smov 0  }
   0x6 LB: > { %s174_s23 = sshll.u32 %s1258_s1, 4  ;;  %s1088_s24 = sadd.s32 4294967295, %s1014_s21   ;;  %s1014_s21 = sphi %s1070_s21, %s1273_s21   ;;  %s1010_s20 = sphi %s1068_s20, %s1272_s20   ;;  %s1006_s19 = sphi %s1066_s19, %s1271_s19   ;;  %s1002_s18 = sphi %s1064_s18, %s1270_s18   ;;  %s175_s23 = int_to_ptr.hbm [resolvable:$true] %s174_s23 }
   0x7   : > { %p709_p0 = scmp.ge.s32.totalorder %s1014_s21, 1  ;;  %p43_p1 = scmp.eq.s32.totalorder %s1088_s24, 0 }
   0x8   : > { %p163_p2 = scmp.lt.s32.totalorder %s1014_s21, 3  ;;  %s1016_s26 = smov [#allocation5]  }
   0x9   : > { %s176_s27 = sshll.u32 %s1016_s26, 4  ;;  %s188_s30 = sshll.u32 %s1259_s2, 4  ;;  %s177_s27 = int_to_ptr.vmem [resolvable:$true] %s176_s27  ;;  %s189_s30 = int_to_ptr.hbm [resolvable:$true] %s188_s30 }
   0xa   : > { %p1093_p3 = pnand %p709_p0, %p163_p2  ;;  %s1017_s6 = smov [#allocation7]  }
   0xb   : > { %s190_s7 = sshll.u32 %s1017_s6, 4  ;;  %s1018_s8 = smov 64   ;;  %s191_s7 = int_to_ptr.vmem [resolvable:$true] %s190_s7 }
   0xc   : > { %p766_p4 = pneg %p1093_p3  ;;  %s1019_s9 = smov 4  }
   0xd   : > { %s708_s10 = sadd.s32 4294967294, %s1014_s21   ;;  %s1107_s11 = sadd.s32 1, %s1014_s21  }
   0xe   : > { %p767_p6 = pnand %p766_p4, %p43_p1  ;;  %s26_s12 = ssub.s32 %s1014_s21, %s1107_s11 }
   0xf   : > { %s29_s13 = sadd.s32 1, %s1010_s20  ;;  %p27_p7 = scmp.eq.s32.totalorder %s26_s12, 0 }
  0x10   : > { %769 = dma.hbm_to_vmem [thread:$0]  (!%p767_p6), %s175_s23, 256, %s177_s27, [#allocation6], %s1018_s8, %s1018_s8, %s1019_s9  }
  0x11   : > { %772 = dma.hbm_to_vmem [thread:$0]  (!%p767_p6), %s189_s30, 256, %s191_s7, [#allocation6], %s1018_s8, %s1018_s8, %s1019_s9  }
  0x12   : > { %p36_p8 = scmp.ne.s32.totalorder %s1010_s20, %s1006_s19  ;;  %p37_p9 = scmp.eq.s32.totalorder %s1014_s21, 0 }
  0x13   : > { %p42_p10 = scmp.ne.s32.totalorder %s1006_s19, %s1002_s18  ;;  %p150_p13 = scmp.eq.s32.totalorder %s1088_s24, 1 }
  0x14   : > { %s1118_s14 = scalar_select %p27_p7, %s1010_s20, %s29_s13  }
  0x15   : > { %p1120_p11 = por %p37_p9, %p36_p8  ;;  %p1126_p12 = por %p43_p1, %p42_p10 }
  0x16   : > { %p156_p0 = scmp.eq.s32.totalorder %s708_s10, 1  ;;  %p783_p2 = scmp.lt.s32.totalorder %s1014_s21, 2 }
  0x17   : > { %s210_s17 = sand.u32 1, %s1010_s20   ;;  %p1133_p4 = por %p150_p13, %p36_p8 }
  0x18   : > { %p1137_p6 = por %p156_p0, %p42_p10  ;;  %s713_s23 = sshll.u32 %s210_s17, 3 }
  0x19   : > { %s714_s26 = sshll.u32 %s1014_s21, 3  ;;  %s214_s30 = scalar_lea.vmem [#allocation2], %s713_s23 }
  0x1a   : > { %s218_s29 = scalar_lea.hbm %s1257_s0, %s714_s26  ;;  %s222_s6 = sshll.u32 %s214_s30, 4  ;;  %s223_s6 = int_to_ptr.vmem [resolvable:$true] %s222_s6 }
  0x1b   : > { %s220_s7 = sshll.u32 %s218_s29, 4  ;;  %p1147_p7 = pnand %p783_p2, %p1120_p11  ;;  %s221_s7 = int_to_ptr.hbm [resolvable:$true] %s220_s7 }
  0x1c   : > { %s211_s9 = scalar_lea.sflag [#allocation3], %s210_s17  ;;  %s914_s10 = sshra.s32 %s221_s7, 4  ;;  %s915_s10 = int_to_ptr.hbm [resolvable:$true] %s914_s10 }
  0x1d   : > { %s916_s12 = scalar_lea.hbm %s915_s10, 8  ;;  %p918_p9 = pneg %p1147_p7 }
  0x1e   : > { %p917_p8 = scmp.ne.s32.totalorder %s915_s10, %s916_s12  ;;  %s921_s26 = scalar_lea.hbm %s1257_s0, 16 }
  0x1f   : > { %p922_p11 = scmp.lt.s32.totalorder %s915_s10, %s1257_s0  ;;  %p923_p0 = scmp.lt.s32.totalorder %s921_s26, %s916_s12 }
  0x20   : > { %p919_p10 = pnand %p918_p9, %p917_p8 }
  0x21   : > { %p924_p2 = por %p923_p0, %p922_p11 }
  0x22   : > { %p920_p13 = pneg %p919_p10 }
  0x24   : > { %p925_p5 = pnand %p924_p2, %p920_p13 }
  0x26   : > { %928 = shalt.err (!%p925_p5)
}
  0x27   : > { %776 = dma.hbm_to_vmem [thread:$0]  (!%p1147_p7), %s221_s7, 128, %s223_s6, %s211_s9  }
  0x28   : > { %231 = sbr.rel (%p1093_p3) target bundleno = 1128 (0x468), region = 40  ;;  %s1164_s17 = sand.u32 (!%p1093_p3), 1, %s1006_s19  }
  0x29   : > { %s716_s28 = sshll.u32 (!%p1093_p3), %s1164_s17, 3  ;;  %s234_s29 = scalar_lea.sflag (!%p1093_p3), [#allocation3], %s1164_s17 }
  0x2a   : > { %s237_s30 = scalar_lea.vmem (!%p1093_p3), [#allocation2], %s716_s28 }
  0x2d   : > { %989 = dma.done.wait (%p1126_p12), %s234_s29, 128  }
  0x2e   : > { %991 = vsyncadd (%p1126_p12), %s234_s29, 4294967168 }
  0x2f   : > { %993 = dma.done.wait (%p43_p1), [#allocation6], 512  }
  0x30   : > { %995 = vsyncadd (%p43_p1), [#allocation6], 4294966784  ;;  %v751_v0 = vld [vmem:[#allocation5 + $0x8] sm:$0xff]  ;;  %v750_v1 = vld [vmem:[#allocation5] sm:$0xff]  ;;  %vm294_vm0 = vcmask 261120   ;;  %s1020_s25 = smov 104  }
  0x31   : > { %304 = vmatpush.bf16.msra.mxu0 %v751_v0  ;;  %v276_v2 = vld [vmem:[%s237_s30] sm:$0xff]  ;;  %s1021_s16 = smov 120   ;;  %s1022_s6 = smov 96   ;;  %vm317_vm1 = vcmask 64512   ;;  %vm354_vm2 = vcmask 1043456   ;;  %vm561_vm3 = vcmask 130048  }
  0x32   : > { %v277_v3 = vpack.c.bf16 %v276_v2, %v276_v2  ;;  %s1023_s7 = smov 80   ;;  %s1024_s8 = smov 72   ;;  %vm564_vm4 = vcmask 195584  }
  0x33   : > { %s1025_s9 = smov 88   ;;  %s1026_s10 = smov 112  }
  0x34   : > { %s1027_s12 = smov 64   ;;  %s1028_s13 = smov 40  }
  0x35   : > { %305 = vmatpush.bf16.msra.mxu0 %v750_v1  ;;  %s1029_s23 = smov 56   ;;  %s1030_s26 = smov 48  }
  0x36   : > { %s1031_s27 = smov 8   ;;  %s1032_s15 = smov 16  }
  0x37   : > { %s1033_s29 = smov 24   ;;  %s747_s30 = sshll.u32 %s1088_s24, 3 }
  0x38   : > { %728 = vmatmul.msk.bf16.vlgmr.msra.gmra.mxu0 %vm294_vm0, %v277_v3  ;;  %s604_s24 = scalar_lea.sflag [#allocation4], %s1164_s17 }
  0xb5   : > { %v307_v4 = vpop.f32.mrf.mxu0 }
  0xb6   : > { %v311_v5 = vpack.c.bf16 %v307_v4, %v307_v4 }
  0xb8   : > { %v313_v6 = vunpack.c.l.b16 %v311_v5 }
  0xba   : > { %v1179_v7 = vpack.c.b16 %v313_v6, %v313_v6 }
  0xbc   : > { %486 = vrot.lane.b32.xlu2 %v1179_v7, %s1020_s25  ;;  %372 = vrot.lane.b32.xlu1 %v1179_v7, %s1021_s16 }
  0xbd   : > { %315 = vrot.lane.b32.xlu0 %v1179_v7, %s1022_s6  ;;  %v309_v8 = vpop.f32.mrf.mxu0  ;;  %s614_s6 = scalar_lea.hbm %s1262_s5, %s747_s30 }
  0xc4   : > { %431 = vrot.lane.b32.xlu2 %v1179_v7, %s1023_s7  ;;  %488 = vrot.lane.b32.xlu1 %v1179_v7, %s1024_s8 }
  0xc5   : > { %374 = vrot.lane.b32.xlu0 %v1179_v7, %s1025_s9  ;;  %s274_s9 = scalar_lea.vmem [#allocation8], %s716_s28  ;;  %s964_s28 = scalar_lea.hbm %s1262_s5, 16 }
  0xcd   : > { %429 = vrot.lane.b32.xlu0 %v1179_v7, %s1026_s10  ;;  %s616_s10 = sshll.u32 %s274_s9, 4  ;;  %s617_s10 = int_to_ptr.vmem [resolvable:$true] %s616_s10 }
 0x116   : > { %v487_v9 = vpop.permute.xlu2 %486 }
 0x11e   : > { %v432_v10 = vpop.permute.xlu2 %431 }
 0x11f   : > { %v437_v11 = vsel %vm317_vm1, %v432_v10, 0 }
 0x120   : > { %446 = vmatpush.bf16.xpose.msrb.mxu0 %v437_v11 }
 0x12e   : > { %v373_v12 = vpop.permute.xlu1 %372 }
 0x12f   : > { %v316_v13 = vpop.permute.xlu0 %315 }
 0x130   : > { %v322_v14 = vsel %vm317_vm1, %v316_v13, 0 }
 0x131   : > { %331 = vmatpush.bf16.xpose.msra.mxu1 %v322_v14 }
 0x136   : > { %v489_v15 = vpop.permute.xlu1 %488 }
 0x137   : > { %v375_v16 = vpop.permute.xlu0 %374  ;;  %v494_v17 = vsel %vm317_vm1, %v489_v15, 0 }
 0x138   : > { %729 = vmatmul.msk.bf16.vlgmr.msra.gmra.mxu1 %vm317_vm1, %v311_v5  ;;  %v380_v18 = vsel %vm317_vm1, %v375_v16, 0 }
 0x139   : > { %389 = vmatpush.bf16.xpose.msra.mxu3 %v380_v18 }
 0x13f   : > { %v430_v19 = vpop.permute.xlu0 %429 }
 0x140   : > { %731 = vmatmul.msk.bf16.vlgmr.msra.gmra.mxu3 %vm317_vm1, %v373_v12  ;;  %733 = vmatmul.msk.bf16.vlgmr.msrb.gmra.mxu0 %vm317_vm1, %v430_v19 }
 0x141   : > { %503 = vmatpush.bf16.xpose.msrb.mxu3 %v494_v17 }
 0x150   : > { %735 = vmatmul.msk.bf16.vlgmr.msrb.gmra.mxu3 %vm317_vm1, %v487_v9 }
 0x1b5   : > { %v333_v20 = vpop.f32.mrf.mxu1 }
 0x1b6   : > { %v337_v21 = vsel %vm317_vm1, %v333_v20, -inf }
 0x1b7   : > { %338 = vmax.xlane.f32.xlu1 %v337_v21 }
 0x1bd   : > { %v335_v22 = vpop.f32.mrf.mxu1  ;;  %v448_v23 = vpop.f32.mrf.mxu0 }
 0x1be   : > { %v452_v28 = vsel %vm317_vm1, %v448_v23, -inf }
 0x1c3   : > { %v391_v24 = vpop.f32.mrf.mxu3 }
 0x1c4   : > { %v395_v25 = vsel %vm317_vm1, %v391_v24, -inf }
 0x1c5   : > { %396 = vmax.xlane.f32.xlu2 %v395_v25  ;;  %v450_v26 = vpop.f32.mrf.mxu0 }
 0x1cb   : > { %v393_v27 = vpop.f32.mrf.mxu3 }
 0x1cd   : > { %453 = vmax.xlane.f32.xlu2 %v452_v28 }
 0x1d3   : > { %v505_v29 = vpop.f32.mrf.mxu3 }
 0x1d4   : > { %v509_v30 = vsel %vm317_vm1, %v505_v29, -inf }
 0x1d5   : > { %510 = vmax.xlane.f32.xlu0 %v509_v30  ;;  %v752_v30 = vld [vmem:[#allocation7] sm:$0xff] }
 0x1db   : > { %v507_v31 = vpop.f32.mrf.mxu3 }
 0x1e5   : > { %349 = vrot.lane.b32.xlu2 %v1179_v7, %s1027_s12  ;;  %s618_s12 = sshll.u32 %s614_s6, 4  ;;  %s619_s12 = int_to_ptr.hbm [resolvable:$true] %s618_s12 }
 0x1ed   : > { %521 = vrot.lane.b32.xlu2 %v1179_v7, %s1028_s13  ;;  %s958_s13 = sshra.s32 %s619_s12, 4  ;;  %s959_s13 = int_to_ptr.hbm [resolvable:$true] %s958_s13 }
 0x1ee   : > { %p965_p12 = scmp.lt.s32.totalorder %s959_s13, %s1262_s5 }
 0x22a   : > { %v339_v32 = vpop.xlane.xlu1 %338 }
 0x22b   : > { %v340_v33 = vsub.f32 %v333_v20, %v339_v32 }
 0x22d   : > { %v341_v34 = vmul.f32 1.442695, %v340_v33 }
 0x22f   : > { %838 = vpow2.f32 %v341_v34 }
 0x235   : > { %v839_v35 = vpop.eup %838 }
 0x236   : > { %v343_v36 = vsel %vm317_vm1, %v839_v35, 0.0 }
 0x237   : > { %344 = vadd.xlane.f32.xlu1 %v343_v36 }
 0x238   : > { %v397_v37 = vpop.xlane.xlu2 %396 }
 0x239   : > { %v398_v40 = vsub.f32 %v391_v24, %v397_v37 }
 0x23b   : > { %v399_v42 = vmul.f32 1.442695, %v398_v40 }
 0x240   : > { %v454_v38 = vpop.xlane.xlu2 %453 }
 0x241   : > { %v455_v39 = vsub.f32 %v448_v23, %v454_v38  ;;  %v837_v38 = vld [vmem:[%s1260_s3] ss:$0 sm:$0xff] }
 0x243   : > { %v456_v41 = vmul.f32 1.442695, %v455_v39 }
 0x245   : > { %840 = vpow2.f32 %v456_v41 }
 0x246   : > { %842 = vpow2.f32 %v399_v42 }
 0x248   : > { %v511_v43 = vpop.xlane.xlu0 %510  ;;  %v350_v44 = vpop.permute.xlu2 %349 }
 0x249   : > { %v356_v45 = vsel %vm354_vm2, %v350_v44, 0  ;;  %v512_v47 = vsub.f32 %v505_v29, %v511_v43  ;;  %v753_v29 = vld [vmem:[#allocation7 + $0x8] sm:$0xff] }
 0x24a   : > { %365 = vmatpush.bf16.msra.mxu2 %v356_v45  ;;  %595 = vmatpush.bf16.msra.mxu0 %v753_v29 }
 0x24b   : > { %v841_v46 = vpop.eup %840  ;;  %v513_v49 = vmul.f32 1.442695, %v512_v47 }
 0x24c   : > { %v458_v48 = vsel %vm317_vm1, %v841_v46, 0.0  ;;  %v843_v50 = vpop.eup %842 }
 0x24d   : > { %459 = vadd.xlane.f32.xlu0 %v458_v48  ;;  %844 = vpow2.f32 %v513_v49  ;;  %v401_v51 = vsel %vm317_vm1, %v843_v50, 0.0 }
 0x24e   : > { %596 = vmatpush.bf16.msra.mxu0 %v752_v30 }
 0x250   : > { %407 = vrot.lane.b32.xlu1 %v1179_v7, %s1029_s23  ;;  %v522_v59 = vpop.permute.xlu2 %521  ;;  %s960_s23 = scalar_lea.hbm %s959_s13, 8 }
 0x251   : > { %v527_v62 = vsel %vm354_vm2, %v522_v59, 0  ;;  %p961_p1 = scmp.ne.s32.totalorder %s959_s13, %s960_s23  ;;  %p966_p7 = scmp.lt.s32.totalorder %s964_s28, %s960_s23 }
 0x253   : > { %v845_v52 = vpop.eup %844  ;;  %p962_p3 = pnand %p961_p1, %p1133_p4  ;;  %p967_p8 = por %p966_p7, %p965_p12 }
 0x254   : > { %v515_v53 = vsel %vm317_vm1, %v845_v52, 0.0 }
 0x255   : > { %402 = vadd.xlane.f32.xlu0 %v401_v51  ;;  %p963_p5 = pneg %p962_p3 }
 0x257   : > { %p968_p9 = pnand %p967_p8, %p963_p5 }
 0x25d   : > { %516 = vadd.xlane.f32.xlu0 %v515_v53 }
 0x271   : > { %464 = vrot.lane.b32.xlu0 %v1179_v7, %s1030_s26 }
 0x2aa   : > { %v345_v54 = vpop.xlane.xlu1 %344 }
 0x2ab   : > { %846 = vrcp.f32 %v345_v54 }
 0x2b1   : > { %v847_v55 = vpop.eup %846 }
 0x2b2   : > { %v347_v56 = vmul.f32 %v847_v55, %v839_v35 }
 0x2b4   : > { %v348_v57 = vpack.c.bf16 %v347_v56, %v347_v56 }
 0x2b6   : > { %730 = vmatmul.msk.bf16.vlgmr.msra.gmra.mxu2 %vm317_vm1, %v348_v57 }
 0x2c0   : > { %v460_v58 = vpop.xlane.xlu0 %459 }
 0x2c2   : > { %v408_v60 = vpop.permute.xlu1 %407 }
 0x2c3   : > { %v413_v61 = vsel %vm354_vm2, %v408_v60, 0 }
 0x2c4   : > { %422 = vmatpush.bf16.msrb.mxu2 %v413_v61 }
 0x2c8   : > { %536 = vmatpush.bf16.msra.mxu2 %v527_v62  ;;  %v403_v63 = vpop.xlane.xlu0 %402 }
 0x2c9   : > { %848 = vrcp.f32 %v403_v63 }
 0x2cf   : > { %v849_v0 = vpop.eup %848 }
 0x2d0   : > { %v405_v1 = vmul.f32 %v849_v0, %v843_v50  ;;  %v517_v2 = vpop.xlane.xlu0 %516 }
 0x2d1   : > { %850 = vrcp.f32 %v517_v2 }
 0x2d2   : > { %v406_v3 = vpack.c.bf16 %v405_v1, %v405_v1  ;;  %852 = vrcp.f32 %v460_v58 }
 0x2d4   : > { %732 = vmatmul.msk.bf16.vlgmr.msrb.gmra.mxu2 %vm317_vm1, %v406_v3 }
 0x2d7   : > { %v851_v4 = vpop.eup %850 }
 0x2d8   : > { %v519_v5 = vmul.f32 %v851_v4, %v845_v52  ;;  %v853_v6 = vpop.eup %852 }
 0x2d9   : > { %v462_v7 = vmul.f32 %v853_v6, %v841_v46 }
 0x2da   : > { %v520_v8 = vpack.c.bf16 %v519_v5, %v519_v5 }
 0x2db   : > { %v463_v11 = vpack.c.bf16 %v462_v7, %v462_v7 }
 0x2e3   : > { %v465_v9 = vpop.permute.xlu0 %464 }
 0x2e4   : > { %736 = vmatmul.msk.bf16.vlgmr.msra.gmra.mxu2 %vm317_vm1, %v520_v8  ;;  %v470_v10 = vsel %vm354_vm2, %v465_v9, 0 }
 0x2e5   : > { %479 = vmatpush.bf16.msrb.mxu1 %v470_v10 }
 0x2e8   : > { %734 = vmatmul.msk.bf16.vlgmr.msrb.gmra.mxu1 %vm317_vm1, %v463_v11 }
 0x339   : > { %v367_v12 = vpop.f32.mrf.mxu2 }
 0x33a   : > { %v371_v32 = vpack.c.bf16 %v367_v12, %v367_v12 }
 0x341   : > { %v369_v13 = vpop.f32.mrf.mxu2 }
 0x357   : > { %v424_v14 = vpop.f32.mrf.mxu2 }
 0x358   : > { %v428_v15 = vpack.c.bf16 %v424_v14, %v424_v14 }
 0x35a   : > { %v544_v16 = vunpack.c.l.b16 %v428_v15 }
 0x35c   : > { %v545_v17 = vpack.c.b16 %v544_v16, %v544_v16 }
 0x35e   : > { %546 = vrot.lane.b32.xlu1 %v545_v17, %s1031_s27 }
 0x35f   : > { %v426_v18 = vpop.f32.mrf.mxu2 }
 0x365   : > { %v481_v19 = vpop.f32.mrf.mxu1 }
 0x366   : > { %v485_v20 = vpack.c.bf16 %v481_v19, %v481_v19 }
 0x367   : > { %v538_v21 = vpop.f32.mrf.mxu2 }
 0x368   : > { %v549_v22 = vunpack.c.l.b16 %v485_v20  ;;  %v542_v23 = vpack.c.bf16 %v538_v21, %v538_v21 }
 0x36a   : > { %v550_v24 = vpack.c.b16 %v549_v22, %v549_v22  ;;  %v554_v25 = vunpack.c.l.b16 %v542_v23 }
 0x36c   : > { %v555_v26 = vpack.c.b16 %v554_v25, %v554_v25  ;;  %551 = vrot.lane.b32.xlu2 %v550_v24, %s1032_s15 }
 0x36d   : > { %v483_v27 = vpop.f32.mrf.mxu1 }
 0x36e   : > { %556 = vrot.lane.b32.xlu1 %v555_v26, %s1033_s29 }
 0x36f   : > { %v540_v28 = vpop.f32.mrf.mxu2 }
 0x3c6   : > { %v552_v34 = vpop.permute.xlu2 %551 }
 0x3d0   : > { %v547_v31 = vpop.permute.xlu1 %546 }
 0x3d1   : > { %v560_v33 = vsel %vm317_vm1, %v371_v32, %v547_v31 }
 0x3d2   : > { %v563_v36 = vsel %vm561_vm3, %v560_v33, %v552_v34 }
 0x3e0   : > { %v557_v35 = vpop.permute.xlu1 %556 }
 0x3e1   : > { %v566_v37 = vsel %vm564_vm4, %v563_v36, %v557_v35 }
 0x3e2   : > { %745 = vmatmul.msk.bf16.vlgmr.msra.gmra.mxu0 %vm294_vm0, %v566_v37 }
 0x45f   : > { %v598_v39 = vpop.f32.mrf.mxu0 }
 0x460   : > { %v599_v40 = vadd.f32 %v837_v38, %v598_v39 }
 0x462   : > { %602 = vst.msk [vmem:[%s274_s9] sm:$0xff] %vm294_vm0, %v599_v40 }
 0x463   : > { %971 = shalt.err (!%p968_p9)
}
 0x464   : > { %764 = dma.vmem_to_hbm [thread:$0]  (%p1133_p4), %s617_s10, 128, %s619_s12, %s604_s24  }
 0x467   : > { %v600_v41 = vpop.f32.mrf.mxu0 }
 0x468 PF: > { %s630_s17 = sand.u32 1, %s1002_s18   ;;  %p1269_p10 = scmp.ge.s32.totalorder %s1014_s21, 2 }
 0x469   : > { %s631_s30 = scalar_lea.sflag [#allocation4], %s630_s17 }
 0x46a   : > { %p778_p13 = pnand %p1269_p10, %p1137_p6 }
 0x46c   : > { %p779_p11 = pneg %p778_p13 }
 0x46e   : > { %997 = dma.done.wait (%p779_p11), %s631_s30, 128  }
 0x46f   : > { %999 = vsyncadd (%p779_p11), %s631_s30, 4294967168  ;;  %p19_p0 = scmp.ge.s32.totalorder %s1107_s11, 4   ;;  %s1270_s18 = smov %s1006_s19 }
 0x470   : > { %s1271_s19 = smov %s1010_s20  ;;  %s1272_s20 = smov %s1118_s14 }
 0x471   : > { %s1273_s21 = smov %s1107_s11  ;;  %21 = sbr.rel (!%p19_p0) target bundleno = 6 (0x6), region = 93 }
 0x476   :  { %637 = vsyncpa [#allocation3], 1 }
 0x477   :  { %639 = vsyncpa [#allocation3 + $0x1], 1 }
 0x478   :  { %640 = vsyncpa [#allocation6], 1 }
 0x479   :  { %641 = vsyncpa [#allocation4], 1 }
 0x47a   :  { %643 = vsyncpa [#allocation4 + $0x1], 1 }

</bundles_post_ra>
